<compile_context>
chip_gen: v6e
topology: v6e:2x2x1
jax: 0.10.0
libtpu: 0.0.40
codegen_flags: <defaults>
</compile_context>

<pallas_src>
import functools

import jax
import jax.numpy as jnp
from jax.experimental import pallas as pl
from jax.experimental.pallas import tpu as pltpu


def _cdiv(a, b):
    return -(-a // b)


def _round_up(x, n):
    return ((x + n - 1) // n) * n


@functools.lru_cache(maxsize=1)
def _vmem_budget_bytes():
    """Max VMEM we are willing to request; leaves headroom for compiler scratch."""
    try:
        cap = int(pltpu.get_tpu_info().vmem_capacity_bytes)
    except Exception:
        cap = 64 << 20            # safe default: v7x per-TensorCore VMEM
    return int(cap * 0.82)        # ~105 MiB on v5e/v6e (128 MiB), ~52 MiB on v7x


# --------------------------------------------------------------------------
# Kernels
# --------------------------------------------------------------------------
def _ffn_resident_kernel(x_ref, w1_ref, b1_ref, w2_ref, b2_ref, o_ref, *,
                         matmul_dtype):
    # x_ref : (tm, d)   w1_ref: (d, 2d)  b1_ref: (1, 2d)
    # w2_ref: (2d, d)   b2_ref: (1, d)   o_ref : (tm, d)
    x = x_ref[...]
    if x.dtype != jnp.dtype(matmul_dtype):
        x = x.astype(matmul_dtype)
    h = jnp.dot(x, w1_ref[...], preferred_element_type=jnp.float32)
    h = jnp.maximum(h + b1_ref[...], 0.0).astype(matmul_dtype)   # fused epilogue
    o = jnp.dot(h, w2_ref[...], preferred_element_type=jnp.float32)
    o_ref[...] = (o + b2_ref[...]).astype(o_ref.dtype)


def _ffn_ktiled_kernel(x_ref, w1_ref, b1_ref, w2_ref, b2_ref, o_ref, acc_ref, *,
                       matmul_dtype):
    # Grid: (row tiles, hidden tiles).  acc_ref: (tm, d) f32 scratch.
    k = pl.program_id(1)

    @pl.when(k == 0)
    def _():
        acc_ref[...] = jnp.zeros_like(acc_ref)

    x = x_ref[...]
    if x.dtype != jnp.dtype(matmul_dtype):
        x = x.astype(matmul_dtype)
    h = jnp.dot(x, w1_ref[...], preferred_element_type=jnp.float32)
    h = jnp.maximum(h + b1_ref[...], 0.0).astype(matmul_dtype)
    acc_ref[...] += jnp.dot(h, w2_ref[...], preferred_element_type=jnp.float32)

    @pl.when(k == pl.num_programs(1) - 1)
    def _():
        o_ref[...] = (acc_ref[...] + b2_ref[...]).astype(o_ref.dtype)


# --------------------------------------------------------------------------
# VMEM sizing / planning
# --------------------------------------------------------------------------
def _resident_vmem_bytes(tm, d_model, hidden, x_item, mm_item):
    return (
        2 * tm * d_model * x_item                # x tile, double-buffered
        + 2 * tm * d_model * x_item              # out tile, double-buffered
        + tm * d_model * mm_item                 # in-kernel bf16 copy of x tile
        + 2 * (2 * d_model * hidden) * mm_item   # w1 + w2 (count 2 buffers)
        + 2 * (hidden + d_model) * 4             # biases (f32)
        + tm * hidden * 4                        # f32 pre-ReLU h
        + tm * hidden * mm_item                  # bf16 h
        + tm * d_model * 4                       # f32 output before downcast
    )


def _ktiled_vmem_bytes(tm, tk, d_model, hidden, x_item, mm_item):
    return (
        2 * tm * d_model * x_item                # x tile
        + 2 * tm * d_model * x_item              # out tile
        + tm * d_model * mm_item                 # bf16 copy of x tile
        + 2 * (2 * d_model * tk) * mm_item       # w1 / w2 K-tiles, double-buffered
        + 2 * (tk + d_model) * 4                 # bias tiles
        + tm * d_model * 4                       # f32 accumulator scratch
        + tm * tk * 4 + tm * tk * mm_item        # f32 + bf16 h tile
        + tm * d_model * 4                       # f32 output before downcast
    )


def _plan(m, d_model, hidden, x_dtype, mm_dtype, block_rows, hidden_block):
    x_item = jnp.dtype(x_dtype).itemsize
    mm_item = jnp.dtype(mm_dtype).itemsize
    budget = _vmem_budget_bytes()

    # Row tile: MXU-aligned (>=128), capped by requested block_rows and by m.
    tm = min(_round_up(max(block_rows, 128), 128), _round_up(m, 128))
    # Ensure >= 2 row tiles when there is enough work (v7x has 2 TensorCores).
    if m >= 256 and _cdiv(m, tm) < 2:
        tm = max(128, _round_up(_cdiv(m, 2), 128))

    can_ktile = (hidden % 128 == 0) and (hidden >= 256)

    if hidden_block is None or not can_ktile:
        # Resident-weights path: shrink tm until the estimate fits the budget.
        t = tm
        while t > 128 and _resident_vmem_bytes(t, d_model, hidden,
                                               x_item, mm_item) > budget:
            t = _round_up(max(128, t // 2), 128)
        est = _resident_vmem_bytes(t, d_model, hidden, x_item, mm_item)
        if est <= budget or not can_ktile:
            return "resident", t, None, est, budget
        tm = t  # resident weights do not fit -> fall through to K tiling.

    # Hidden (K) tiled path: tk must be a 128-multiple divisor of hidden so the
    # reduction never sees a partial (garbage-padded) block.
    tk_candidates = sorted(
        (c for c in range(128, hidden + 1, 128) if hidden % c == 0),
        reverse=True)
    if hidden_block is not None:
        want = max(128, min(_round_up(hidden_block, 128), hidden))
        filtered = [c for c in tk_candidates if c <= want]
        tk_candidates = filtered or [tk_candidates[-1]]

    t = tm
    tk = tk_candidates[-1]
    for cand in tk_candidates:
        if _ktiled_vmem_bytes(t, cand, d_model, hidden, x_item, mm_item) <= budget:
            tk = cand
            break
    while t > 128 and _ktiled_vmem_bytes(t, tk, d_model, hidden,
                                         x_item, mm_item) > budget:
        t = _round_up(max(128, t // 2), 128)
    est = _ktiled_vmem_bytes(t, tk, d_model, hidden, x_item, mm_item)
    return "ktiled", t, tk, est, budget


# --------------------------------------------------------------------------
# pallas_call wrappers
# --------------------------------------------------------------------------
def _call_resident(x2d, w1, b1, w2, b2, out_dtype, tm, mm_dtype, vmem_limit):
    m, d_model = x2d.shape
    hidden = w1.shape[1]
    kernel = functools.partial(_ffn_resident_kernel, matmul_dtype=mm_dtype)
    return pl.pallas_call(
        kernel,
        out_shape=jax.ShapeDtypeStruct((m, d_model), out_dtype),
        grid_spec=pltpu.PrefetchScalarGridSpec(
            num_scalar_prefetch=0,
            grid=(_cdiv(m, tm),),
            in_specs=[
                pl.BlockSpec((tm, d_model), lambda i: (i, 0)),
                pl.BlockSpec((d_model, hidden), lambda i: (0, 0)),
                pl.BlockSpec((1, hidden), lambda i: (0, 0)),
                pl.BlockSpec((hidden, d_model), lambda i: (0, 0)),
                pl.BlockSpec((1, d_model), lambda i: (0, 0)),
            ],
            out_specs=pl.BlockSpec((tm, d_model), lambda i: (i, 0)),
        ),
        compiler_params=pltpu.CompilerParams(
            dimension_semantics=("parallel",),
            vmem_limit_bytes=vmem_limit,
        ),
    )(x2d, w1, b1, w2, b2)


def _call_ktiled(x2d, w1, b1, w2, b2, out_dtype, tm, tk, mm_dtype, vmem_limit):
    m, d_model = x2d.shape
    hidden = w1.shape[1]
    kernel = functools.partial(_ffn_ktiled_kernel, matmul_dtype=mm_dtype)
    return pl.pallas_call(
        kernel,
        out_shape=jax.ShapeDtypeStruct((m, d_model), out_dtype),
        grid_spec=pltpu.PrefetchScalarGridSpec(
            num_scalar_prefetch=0,
            grid=(_cdiv(m, tm), hidden // tk),
            in_specs=[
                pl.BlockSpec((tm, d_model), lambda i, k: (i, 0)),
                pl.BlockSpec((d_model, tk), lambda i, k: (0, k)),
                pl.BlockSpec((1, tk), lambda i, k: (0, k)),
                pl.BlockSpec((tk, d_model), lambda i, k: (k, 0)),
                pl.BlockSpec((1, d_model), lambda i, k: (0, 0)),
            ],
            out_specs=pl.BlockSpec((tm, d_model), lambda i, k: (i, 0)),
            scratch_shapes=[pltpu.VMEM((tm, d_model), jnp.float32)],
        ),
        compiler_params=pltpu.CompilerParams(
            dimension_semantics=("parallel", "arbitrary"),
            vmem_limit_bytes=vmem_limit,
        ),
    )(x2d, w1, b1, w2, b2)


# --------------------------------------------------------------------------
# Public API
# --------------------------------------------------------------------------
def feed_forward(x, w1, b1, w2, b2, *, block_rows=1024,
                 matmul_dtype=jnp.bfloat16, hidden_block=None):
    """x: (..., d_model). Weights pre-transposed to (in, out): w1 (d,2d), w2 (2d,d).

    hidden_block: optionally force the hidden-dim (K) tiled path with this tile.
    """
    orig_shape = x.shape
    d_model = orig_shape[-1]
    hidden = w1.shape[1]
    mm_dt = jnp.dtype(matmul_dtype)

    # Hoist dtype conversions out of the kernel (done once, only if needed).
    if w1.dtype != mm_dt:
        w1 = w1.astype(mm_dt)
    if w2.dtype != mm_dt:
        w2 = w2.astype(mm_dt)
    b1 = b1.reshape(1, hidden)
    b2 = b2.reshape(1, d_model)
    if b1.dtype != jnp.float32:
        b1 = b1.astype(jnp.float32)
    if b2.dtype != jnp.float32:
        b2 = b2.astype(jnp.float32)

    x2d = x.reshape(-1, d_model)
    m = x2d.shape[0]

    path, tm, tk, est, budget = _plan(m, d_model, hidden, x.dtype, mm_dt,
                                      block_rows, hidden_block)
    vmem_limit = min(budget, max(32 << 20, int(est * 1.25) + (2 << 20)))

    if path == "resident":
        out = _call_resident(x2d, w1, b1, w2, b2, x.dtype, tm, mm_dt, vmem_limit)
    else:
        out = _call_ktiled(x2d, w1, b1, w2, b2, x.dtype, tm, tk, mm_dt, vmem_limit)
    return out.reshape(orig_shape)


def init_params(key, d_model, *, weight_dtype=jnp.bfloat16,
                bias_dtype=jnp.float32):
    """Deterministic init mimicking nn.Linear defaults: U(-1/sqrt(fan_in), +)."""
    k1, k2, k3, k4 = jax.random.split(key, 4)
    hidden = d_model * 2
    bound1 = 1.0 / (d_model ** 0.5)
    bound2 = 1.0 / (hidden ** 0.5)
    # Stored transposed relative to PyTorch (out, in) -> (in, out).
    w1 = jax.random.uniform(k1, (d_model, hidden), jnp.float32,
                            -bound1, bound1).astype(weight_dtype)
    b1 = jax.random.uniform(k2, (1, hidden), jnp.float32,
                            -bound1, bound1).astype(bias_dtype)
    w2 = jax.random.uniform(k3, (hidden, d_model), jnp.float32,
                            -bound2, bound2).astype(weight_dtype)
    b2 = jax.random.uniform(k4, (1, d_model), jnp.float32,
                            -bound2, bound2).astype(bias_dtype)
    return w1, b1, w2, b2


def reference(x, w1, b1, w2, b2, matmul_dtype=jnp.bfloat16):
    """Plain-JAX reference with the same bf16-input / f32-accumulate math."""
    d_model = x.shape[-1]
    x2d = x.reshape(-1, d_model).astype(matmul_dtype).astype(jnp.float32)
    w1f = w1.astype(matmul_dtype).astype(jnp.float32)
    w2f = w2.astype(matmul_dtype).astype(jnp.float32)
    h = jnp.maximum(x2d @ w1f + b1.astype(jnp.float32).reshape(1, -1), 0.0)
    h = h.astype(matmul_dtype).astype(jnp.float32)
    o = h @ w2f + b2.astype(jnp.float32).reshape(1, -1)
    return o.reshape(x.shape).astype(x.dtype)


if __name__ == "__main__":
    d_model = 128          # lane-aligned (multiple of 128)
    batch, seq = 2, 8

    key = jax.random.PRNGKey(0)
    kx, kp = jax.random.split(key)
    x = jax.random.normal(kx, (batch, seq, d_model), jnp.float32)
    w1, b1, w2, b2 = init_params(kp, d_model)

    ref = reference(x, w1, b1, w2, b2)

    # Default path: fully resident bf16 weights, row-tiled activations.
    out = jax.block_until_ready(feed_forward(x, w1, b1, w2, b2))
    assert out.shape == x.shape and out.dtype == x.dtype
    err = float(jnp.max(jnp.abs(out - ref)))
    assert jnp.allclose(out, ref, atol=2e-2, rtol=2e-2), f"resident max err {err}"

    # Hidden-dim (K) tiled path (used automatically for large d_model on v7x);
    # forced here so it is exercised and validated too.
    out_k = jax.block_until_ready(
        feed_forward(x, w1, b1, w2, b2, hidden_block=128))
    err_k = float(jnp.max(jnp.abs(out_k - ref)))
    assert jnp.allclose(out_k, ref, atol=2e-2, rtol=2e-2), f"ktiled max err {err_k}"

    print("KERNEL_OK")
</pallas_src>

<mosaic_0001>
module attributes {stable_mosaic.version = 11 : i64} {
  func.func @_ffn_resident_kernel(%arg0: i32, %arg1: memref<128x128xf32, #tpu.memory_space<vmem>>, %arg2: memref<128x256xbf16, #tpu.memory_space<vmem>>, %arg3: memref<1x256xf32, #tpu.memory_space<vmem>>, %arg4: memref<256x128xbf16, #tpu.memory_space<vmem>>, %arg5: memref<1x128xf32, #tpu.memory_space<vmem>>, %arg6: memref<128x128xf32, #tpu.memory_space<vmem>>) attributes {dimension_semantics = [#tpu.dimension_semantics<parallel>], iteration_bounds = array<i64: 1>, scalar_prefetch = 0 : i64, scratch_operands = 0 : i64, tpu.core_type = #tpu.core_type<tc>, window_params = [{transform_indices = @transform_0, window_bounds = array<i64: 128, 128>}, {pipeline_mode = #tpu.pipeline_mode<synchronous>, transform_indices = @transform_1, window_bounds = array<i64: 128, 256>}, {pipeline_mode = #tpu.pipeline_mode<synchronous>, transform_indices = @transform_2, window_bounds = array<i64: 1, 256>}, {pipeline_mode = #tpu.pipeline_mode<synchronous>, transform_indices = @transform_3, window_bounds = array<i64: 256, 128>}, {pipeline_mode = #tpu.pipeline_mode<synchronous>, transform_indices = @transform_4, window_bounds = array<i64: 1, 128>}, {transform_indices = @transform_5, window_bounds = array<i64: 128, 128>}]} {
    %c0 = arith.constant 0 : index
    %c0_0 = arith.constant 0 : index
    %0 = vector.load %arg1[%c0, %c0_0] : memref<128x128xf32, #tpu.memory_space<vmem>>, vector<128x128xf32>
    %1 = arith.truncf %0 : vector<128x128xf32> to vector<128x128xbf16>
    %c0_1 = arith.constant 0 : index
    %c0_2 = arith.constant 0 : index
    %2 = vector.load %arg2[%c0_1, %c0_2] : memref<128x256xbf16, #tpu.memory_space<vmem>>, vector<128x256xbf16>
    %cst = arith.constant dense<0.000000e+00> : vector<128x256xf32>
    %3 = tpu.matmul %1, %2, %cst {dimension_numbers = #tpu.dot_dimension_numbers<[1], [0], [0], [1], [0, 0, 1, 1], [], []>} : vector<128x128xbf16>, vector<128x256xbf16>, vector<128x256xf32> -> vector<128x256xf32>
    %c0_3 = arith.constant 0 : index
    %c0_4 = arith.constant 0 : index
    %4 = vector.load %arg3[%c0_3, %c0_4] : memref<1x256xf32, #tpu.memory_space<vmem>>, vector<1x256xf32>
    %5 = vector.broadcast %4 : vector<1x256xf32> to vector<128x256xf32>
    %6 = arith.addf %3, %5 : vector<128x256xf32>
    %cst_5 = arith.constant 0.000000e+00 : f32
    %7 = vector.broadcast %cst_5 : f32 to vector<128x256xf32>
    %8 = arith.maximumf %6, %7 : vector<128x256xf32>
    %9 = arith.truncf %8 : vector<128x256xf32> to vector<128x256xbf16>
    %c0_6 = arith.constant 0 : index
    %c0_7 = arith.constant 0 : index
    %10 = vector.load %arg4[%c0_6, %c0_7] : memref<256x128xbf16, #tpu.memory_space<vmem>>, vector<256x128xbf16>
    %cst_8 = arith.constant dense<0.000000e+00> : vector<128x128xf32>
    %11 = tpu.matmul %9, %10, %cst_8 {dimension_numbers = #tpu.dot_dimension_numbers<[1], [0], [0], [1], [0, 0, 1, 1], [], []>} : vector<128x256xbf16>, vector<256x128xbf16>, vector<128x128xf32> -> vector<128x128xf32>
    %c0_9 = arith.constant 0 : index
    %c0_10 = arith.constant 0 : index
    %12 = vector.load %arg5[%c0_9, %c0_10] : memref<1x128xf32, #tpu.memory_space<vmem>>, vector<1x128xf32>
    %13 = vector.broadcast %12 : vector<1x128xf32> to vector<128x128xf32>
    %14 = arith.addf %11, %13 : vector<128x128xf32>
    %c0_11 = arith.constant 0 : index
    %c0_12 = arith.constant 0 : index
    %15 = vector.load %arg6[%c0_11, %c0_12] : memref<128x128xf32, #tpu.memory_space<vmem>>, vector<128x128xf32>
    tpu.vector_store %arg6[%c0_11, %c0_12], %14 {strides = array<i32>} : memref<128x128xf32, #tpu.memory_space<vmem>>, vector<128x128xf32>,
    return
  }
  func.func @transform_0(%arg0: i32) -> (i32, i32) {
    %c0_i32 = arith.constant 0 : i32
    %c0_i32_0 = arith.constant 0 : i32
    return %arg0, %c0_i32 : i32, i32
  }
  func.func @transform_1(%arg0: i32) -> (i32, i32) {
    %c0_i32 = arith.constant 0 : i32
    %c0_i32_0 = arith.constant 0 : i32
    %c0_i32_1 = arith.constant 0 : i32
    return %c0_i32, %c0_i32_0 : i32, i32
  }
  func.func @transform_2(%arg0: i32) -> (i32, i32) {
    %c0_i32 = arith.constant 0 : i32
    %c0_i32_0 = arith.constant 0 : i32
    %c0_i32_1 = arith.constant 0 : i32
    return %c0_i32, %c0_i32_0 : i32, i32
  }
  func.func @transform_3(%arg0: i32) -> (i32, i32) {
    %c0_i32 = arith.constant 0 : i32
    %c0_i32_0 = arith.constant 0 : i32
    %c0_i32_1 = arith.constant 0 : i32
    return %c0_i32, %c0_i32_0 : i32, i32
  }
  func.func @transform_4(%arg0: i32) -> (i32, i32) {
    %c0_i32 = arith.constant 0 : i32
    %c0_i32_0 = arith.constant 0 : i32
    %c0_i32_1 = arith.constant 0 : i32
    return %c0_i32, %c0_i32_0 : i32, i32
  }
  func.func @transform_5(%arg0: i32) -> (i32, i32) {
    %c0_i32 = arith.constant 0 : i32
    %c0_i32_0 = arith.constant 0 : i32
    return %arg0, %c0_i32 : i32, i32
  }
}

</mosaic_0001>

<bundles_post_ra>
// kernel: tpu_custom_call.1
= control target key start
LH: loop header
LB: loop body
LE: loop exit
PB: predicated region body
PF: predicated region fallthrough
CT: control target
= control target key end

     0   :  { %10 = vsyncpa [#allocation3], 0  ;;  %s982_s0 = inlined_call_operand.hbm [shape: f32[16,128], index: 0, kind: input, shape index: {}]   ;;  %s983_s1 = inlined_call_operand.hbm [shape: bf16[128,256], index: 1, kind: input, shape index: {}]   ;;  %s984_s2 = inlined_call_operand.vmem [shape: f32[1,256], index: 2, kind: input, shape index: {}]   ;;  %s985_s3 = inlined_call_operand.hbm [shape: bf16[256,128], index: 3, kind: input, shape index: {}]   ;;  %s986_s4 = inlined_call_operand.vmem [shape: f32[1,128], index: 4, kind: input, shape index: {}]   ;;  %s987_s5 = inlined_call_operand.hbm [shape: f32[16,128], index: 5, kind: output, shape index: {}]  }
   0x1   :  { %11 = vsyncpa [#allocation6], 0 }
   0x2   :  { %12 = vsyncpa [#allocation4], 0 }
   0x3   :  { %17 = vsyncadd [#allocation3], 1792  ;;  %s854_s18 = smov [#allocation5]   ;;  %s855_s20 = smov [#allocation2]  }
   0x4   :  { %s30_s19 = sshll.u32 %s854_s18, 4  ;;  %s18_s21 = sshll.u32 %s855_s20, 4  ;;  %s31_s19 = int_to_ptr.vmem [resolvable:$true] %s30_s19  ;;  %s19_s21 = int_to_ptr.vmem [resolvable:$true] %s18_s21 }
   0x5   :  { %s776_s22 = scalar_lea.vmem %s31_s19, 2048  ;;  %p781_p1 = scmp.lt.s32.totalorder %s31_s19, %s31_s19 }
   0x6   :  { %p777_p0 = scmp.ne.s32.totalorder %s31_s19, %s776_s22  ;;  %p782_p2 = scmp.lt.s32.totalorder %s776_s22, %s776_s22 }
   0x8   :  { %p783_p3 = por %p782_p2, %p781_p1 }
   0xa   :  { %p784_p4 = pnand %p783_p3, %p777_p0 }
   0xc   :  { %787 = shalt.err (!%p784_p4)
}
   0xd   :  { %s856_s23 = smov 128   ;;  %s857_s24 = smov 8  }
   0xe   :  { %36 = dma.hbm_to_vmem [thread:$0]  %s983_s1, 2048, %s31_s19, [#allocation6], %s856_s23, %s856_s23, %s857_s24  }
   0xf   :  { %s796_s27 = scalar_lea.vmem %s19_s21, 256  ;;  %s800_s28 = scalar_lea.vmem %s19_s21, 2048 }
  0x10   :  { %p797_p5 = scmp.ne.s32.totalorder %s19_s21, %s796_s27  ;;  %p801_p6 = scmp.lt.s32.totalorder %s19_s21, %s19_s21 }
  0x11   :  { %p802_p7 = scmp.lt.s32.totalorder %s800_s28, %s796_s27 }
  0x13   :  { %p803_p8 = por %p802_p7, %p801_p6 }
  0x15   :  { %p804_p9 = pnand %p803_p8, %p797_p5 }
  0x17   :  { %807 = shalt.err (!%p804_p9)
}
  0x18   :  { %24 = dma.hbm_to_vmem [thread:$0]  %s982_s0, 256, %s19_s21, [#allocation3], %s856_s23, %s856_s23, %s857_s24  }
  0x19   :  { %s858_s6 = smov [#allocation7]  }
  0x1a   :  { %s44_s7 = sshll.u32 %s858_s6, 4  ;;  %s45_s7 = int_to_ptr.vmem [resolvable:$true] %s44_s7 }
  0x1b   :  { %s816_s8 = scalar_lea.vmem %s45_s7, 2048  ;;  %p821_p11 = scmp.lt.s32.totalorder %s45_s7, %s45_s7 }
  0x1c   :  { %p817_p10 = scmp.ne.s32.totalorder %s45_s7, %s816_s8  ;;  %p822_p12 = scmp.lt.s32.totalorder %s816_s8, %s816_s8 }
  0x1e   :  { %p823_p13 = por %p822_p12, %p821_p11 }
  0x20   :  { %p824_p0 = pnand %p823_p13, %p817_p10 }
  0x22   :  { %827 = shalt.err (!%p824_p0)
}
  0x23   :  { %s859_s1 = smov 64   ;;  %s860_s9 = smov 4  }
  0x24   :  { %50 = dma.hbm_to_vmem [thread:$0]  %s985_s3, 2048, %s45_s7, [#allocation6], %s859_s1, %s859_s1, %s860_s9  }
  0x25   :  { %848 = dma.done.wait [#allocation3], 2048  }
  0x26   :  { %849 = vsyncadd [#allocation3], 4294965248 }
  0x27   :  { %850 = dma.done.wait [#allocation6], 4096  }
  0x28   :  { %851 = vsyncadd [#allocation6], 4294963200  ;;  %v861_v0 = vmov 0   ;;  %v728_v1 = vld [vmem:[#allocation5 + $0x74] ss:$8 sps:$4 sm:$0xff]   ;;  %v756_v18 = vld [vmem:[#allocation7 + $0x68] sm:$0xff]   ;;  %v105_v57 = vlaneseq }
  0x29   :  { %227 = vmatprep.mubr.bf16.mxu0 %v861_v0  ;;  %v730_v2 = vld [vmem:[#allocation5 + $0x70] ss:$8 sps:$4 sm:$0xff]   ;;  %195 = vmatprep.subr.bf16.mxu0 %v728_v1  ;;  %v731_v3 = vld [vmem:[#allocation5 + $0x64] ss:$8 sps:$4 sm:$0xff]   ;;  %v733_v4 = vld [vmem:[#allocation5 + $0x60] ss:$8 sps:$4 sm:$0xff]  }
  0x2a   :  { %196 = vmatpush1.bf16.msra.mxu0 %v730_v2  ;;  %v734_v5 = vld [vmem:[#allocation5 + $0x54] ss:$8 sps:$4 sm:$0xff]   ;;  %v736_v6 = vld [vmem:[#allocation5 + $0x50] ss:$8 sps:$4 sm:$0xff]   ;;  %v737_v7 = vld [vmem:[#allocation5 + $0x44] ss:$8 sps:$4 sm:$0xff]  }
  0x2b   :  { %197 = vmatprep.subr.bf16.mxu0 %v731_v3  ;;  %v739_v8 = vld [vmem:[#allocation5 + $0x40] ss:$8 sps:$4 sm:$0xff]   ;;  %v740_v9 = vld [vmem:[#allocation5 + $0x34] ss:$8 sps:$4 sm:$0xff]   ;;  %v742_v10 = vld [vmem:[#allocation5 + $0x30] ss:$8 sps:$4 sm:$0xff]  }
  0x2c   :  { %v743_v11 = vld [vmem:[#allocation5 + $0x24] ss:$8 sps:$4 sm:$0xff]   ;;  %v752_v12 = vld [vmem:[#allocation7 + $0x78] sm:$0xff]   ;;  %v745_v13 = vld [vmem:[#allocation5 + $0x20] ss:$8 sps:$4 sm:$0xff]   ;;  %v106_v58 = vshrl.u32 %v105_v57, 7 }
  0x2d   :  { %v753_v14 = vld [vmem:[#allocation7 + $0x38] sm:$0xff]   ;;  %655 = vmatprep.subr.bf16.mxu1 %v752_v12  ;;  %v754_v16 = vld [vmem:[#allocation7 + $0x70] sm:$0xff]   ;;  %v749_v20 = vld [vmem:[#allocation5 + $0x4] ss:$8 sps:$4 sm:$0xff]  }
  0x2e   :  { %198 = vmatpush1.bf16.msra.mxu0 %v733_v4  ;;  %v746_v15 = vld [vmem:[#allocation5 + $0x14] ss:$8 sps:$4 sm:$0xff]   ;;  %656 = vmatpush3.bf16.msra.mxu1 %v753_v14  ;;  %v748_v19 = vld [vmem:[#allocation5 + $0x10] ss:$8 sps:$4 sm:$0xff]   ;;  %v757_v21 = vld [vmem:[#allocation7 + $0x28] sm:$0xff]   ;;  %v111_v59 = vsub.s32 1, %v106_v58 }
  0x2f   :  { %199 = vmatprep.subr.bf16.mxu0 %v734_v5  ;;  %v755_v17 = vld [vmem:[#allocation7 + $0x30] sm:$0xff]   ;;  %657 = vmatprep.subr.bf16.mxu1 %v754_v16  ;;  %v758_v22 = vld [vmem:[#allocation7 + $0x60] sm:$0xff]   ;;  %v64_v25 = vld [vmem:[#allocation2 + $0x8] sm:$0xff]  ;;  %v107_v60 = vsub.s32 0, %v106_v58 }
  0x30   :  { %v751_v23 = vld [vmem:[#allocation5] ss:$8 sps:$4 sm:$0xff]   ;;  %v760_v27 = vld [vmem:[#allocation7 + $0x58] sm:$0xff]   ;;  %v65_v30 = vld [vmem:[#allocation2 + $0x10] sm:$0xff] }
  0x31   :  { %v63_v24 = vld [vmem:[#allocation2] sm:$0xff]  ;;  %v761_v29 = vld [vmem:[#allocation7 + $0x18] sm:$0xff]   ;;  %v68_v34 = vld [vmem:[#allocation2 + $0x28] sm:$0xff] }
  0x32   :  { %200 = vmatpush1.bf16.msra.mxu0 %v736_v6  ;;  %658 = vmatpush3.bf16.msra.mxu1 %v755_v17  ;;  %v759_v26 = vld [vmem:[#allocation7 + $0x20] sm:$0xff]   ;;  %v79_v28 = vpack.c.bf16 %v64_v25, %v63_v24  ;;  %v66_v31 = vld [vmem:[#allocation2 + $0x18] sm:$0xff]  ;;  %v69_v36 = vld [vmem:[#allocation2 + $0x30] sm:$0xff] }
  0x33   :  { %201 = vmatprep.subr.bf16.mxu0 %v737_v7  ;;  %659 = vmatprep.subr.bf16.mxu1 %v756_v18  ;;  %v80_v32 = vpack.c.bf16 %v66_v31, %v65_v30  ;;  %v67_v33 = vld [vmem:[#allocation2 + $0x20] sm:$0xff]  ;;  %v70_v37 = vld [vmem:[#allocation2 + $0x38] sm:$0xff]  ;;  %v72_v40 = vld [vmem:[#allocation2 + $0x48] sm:$0xff] }
  0x34   :  { %v81_v35 = vpack.c.bf16 %v68_v34, %v67_v33  ;;  %v82_v38 = vpack.c.bf16 %v70_v37, %v69_v36  ;;  %v71_v39 = vld [vmem:[#allocation2 + $0x40] sm:$0xff]  ;;  %v73_v42 = vld [vmem:[#allocation2 + $0x50] sm:$0xff]  ;;  %v74_v43 = vld [vmem:[#allocation2 + $0x58] sm:$0xff] }
  0x35   :  { %v83_v41 = vpack.c.bf16 %v72_v40, %v71_v39  ;;  %v84_v44 = vpack.c.bf16 %v74_v43, %v73_v42  ;;  %v75_v45 = vld [vmem:[#allocation2 + $0x60] sm:$0xff]  ;;  %v76_v46 = vld [vmem:[#allocation2 + $0x68] sm:$0xff]  ;;  %v77_v48 = vld [vmem:[#allocation2 + $0x70] sm:$0xff] }
  0x36   :  { %202 = vmatpush1.bf16.msra.mxu0 %v739_v8  ;;  %660 = vmatpush3.bf16.msra.mxu1 %v757_v21  ;;  %v85_v47 = vpack.c.bf16 %v76_v46, %v75_v45  ;;  %v78_v49 = vld [vmem:[#allocation2 + $0x78] sm:$0xff]  ;;  %v762_v51 = vld [vmem:[#allocation7 + $0x50] sm:$0xff]   ;;  %v764_v53 = vld [vmem:[#allocation7 + $0x48] sm:$0xff]  }
  0x37   :  { %203 = vmatprep.subr.bf16.mxu0 %v740_v9  ;;  %661 = vmatprep.subr.bf16.mxu1 %v758_v22  ;;  %v86_v50 = vpack.c.bf16 %v78_v49, %v77_v48  ;;  %v763_v52 = vld [vmem:[#allocation7 + $0x10] sm:$0xff]   ;;  %v765_v54 = vld [vmem:[#allocation7 + $0x8] sm:$0xff]   ;;  %v766_v55 = vld [vmem:[#allocation7 + $0x40] sm:$0xff]  }
  0x38   :  { %v767_v56 = vld [vmem:[#allocation7] sm:$0xff]  }
  0x39   :  { %v103_v61 = vld [vmem:[%s984_s2] sm:$0x3] }
  0x3a   :  { %204 = vmatpush1.bf16.msra.mxu0 %v742_v10  ;;  %662 = vmatpush3.bf16.msra.mxu1 %v759_v26  ;;  %v919_v63 = vrot.slane %v103_v61, %v111_v59 }
  0x3b   :  { %205 = vmatprep.subr.bf16.mxu0 %v743_v11  ;;  %663 = vmatprep.subr.bf16.mxu1 %v760_v27 }
  0x3e   :  { %206 = vmatpush1.bf16.msra.mxu0 %v745_v13  ;;  %664 = vmatpush3.bf16.msra.mxu1 %v761_v29 }
  0x3f   :  { %207 = vmatprep.subr.bf16.mxu0 %v746_v15  ;;  %665 = vmatprep.subr.bf16.mxu1 %v762_v51 }
  0x42   :  { %208 = vmatpush1.bf16.msra.mxu0 %v748_v19  ;;  %666 = vmatpush3.bf16.msra.mxu1 %v763_v52 }
  0x43   :  { %209 = vmatprep.subr.bf16.mxu0 %v749_v20  ;;  %667 = vmatprep.subr.bf16.mxu1 %v764_v53 }
  0x46   :  { %210 = vmatpush1.bf16.msra.mxu0 %v751_v23  ;;  %668 = vmatpush3.bf16.msra.mxu1 %v765_v54 }
  0x47   :  { %669 = vmatprep.subr.bf16.mxu1 %v766_v55 }
  0x49   :  { %228 = vmatmul.mubr.bf16.vlgmr.msra.gmra.mxu0 %v79_v28 }
  0x4a   :  { %237 = vmatprep.mubr.bf16.mxu0 %v861_v0  ;;  %670 = vmatpush3.bf16.msra.mxu1 %v767_v56 }
  0x51   :  { %238 = vmatmul.mubr.bf16.gmra.mxu0 %v80_v32 }
  0x52   :  { %247 = vmatprep.mubr.bf16.mxu0 %v861_v0 }
  0x59   :  { %248 = vmatmul.mubr.bf16.gmra.mxu0 %v81_v35 }
  0x5a   :  { %257 = vmatprep.mubr.bf16.mxu0 %v861_v0 }
  0x61   :  { %258 = vmatmul.mubr.bf16.gmra.mxu0 %v82_v38 }
  0x62   :  { %267 = vmatprep.mubr.bf16.mxu0 %v861_v0 }
  0x69   :  { %268 = vmatmul.mubr.bf16.gmra.mxu0 %v83_v41 }
  0x6a   :  { %277 = vmatprep.mubr.bf16.mxu0 %v861_v0 }
  0x71   :  { %278 = vmatmul.mubr.bf16.gmra.mxu0 %v84_v44 }
  0x72   :  { %287 = vmatprep.mubr.bf16.mxu0 %v861_v0 }
  0x79   :  { %288 = vmatmul.mubr.bf16.gmra.mxu0 %v85_v47 }
  0x7a   :  { %297 = vmatprep.mubr.bf16.mxu0 %v861_v0  ;;  %v921_v0 = vrot.slane %v103_v61, %v107_v60 }
  0x81   :  { %298 = vmatmul.mubr.bf16.gmra.mxu0 %v86_v50 }
 0x109   :  { %v229_v62 = vpop.f32.mrf.mxu0 }
 0x10a   :  { %v230_v5 = vadd.f32 %v229_v62, %v921_v0 }
 0x10b   :  { %v231_v1 = vpop.f32.mrf.mxu0 }
 0x10c   :  { %v232_v3 = vadd.f32 %v231_v1, %v919_v63  ;;  %v308_v12 = vmax.f32 %v230_v5, 0.0 }
 0x10d   :  { %v233_v2 = vpop.f32.mrf.mxu0 }
 0x10e   :  { %v234_v4 = vadd.f32 %v233_v2, %v921_v0  ;;  %v309_v10 = vmax.f32 %v232_v3, 0.0 }
 0x10f   :  { %v235_v6 = vpop.f32.mrf.mxu0 }
 0x110   :  { %v236_v7 = vadd.f32 %v235_v6, %v919_v63  ;;  %v310_v8 = vmax.f32 %v234_v4, 0.0 }
 0x111   :  { %v239_v9 = vpop.f32.mrf.mxu0 }
 0x112   :  { %v311_v11 = vmax.f32 %v236_v7, 0.0  ;;  %v340_v15 = vpack.c.bf16 %v310_v8, %v308_v12  ;;  %v240_v19 = vadd.f32 %v239_v9, %v921_v0 }
 0x113   :  { %v241_v13 = vpop.f32.mrf.mxu0 }
 0x114   :  { %v341_v14 = vpack.c.bf16 %v311_v11, %v309_v10  ;;  %v242_v17 = vadd.f32 %v241_v13, %v919_v63  ;;  %v312_v26 = vmax.f32 %v240_v19, 0.0 }
 0x115   :  { %v243_v16 = vpop.f32.mrf.mxu0 }
 0x116   :  { %v244_v18 = vadd.f32 %v243_v16, %v921_v0  ;;  %523 = vmatprep.mubr.bf16.mxu1 %v341_v14  ;;  %v313_v24 = vmax.f32 %v242_v17, 0.0 }
 0x117   :  { %v245_v20 = vpop.f32.mrf.mxu0  ;;  %524 = vmatmul.mubr.bf16.vlgmr.msra.gmra.mxu1 %v340_v15 }
 0x118   :  { %v246_v21 = vadd.f32 %v245_v20, %v919_v63  ;;  %v314_v22 = vmax.f32 %v244_v18, 0.0 }
 0x119   :  { %v249_v23 = vpop.f32.mrf.mxu0 }
 0x11a   :  { %v315_v25 = vmax.f32 %v246_v21, 0.0  ;;  %v342_v29 = vpack.c.bf16 %v314_v22, %v312_v26  ;;  %v250_v33 = vadd.f32 %v249_v23, %v921_v0 }
 0x11b   :  { %v251_v27 = vpop.f32.mrf.mxu0 }
 0x11c   :  { %v343_v28 = vpack.c.bf16 %v315_v25, %v313_v24  ;;  %v252_v31 = vadd.f32 %v251_v27, %v919_v63  ;;  %v316_v40 = vmax.f32 %v250_v33, 0.0 }
 0x11d   :  { %v253_v30 = vpop.f32.mrf.mxu0 }
 0x11e   :  { %v254_v32 = vadd.f32 %v253_v30, %v921_v0  ;;  %531 = vmatprep.mubr.bf16.mxu1 %v343_v28  ;;  %v317_v38 = vmax.f32 %v252_v31, 0.0 }
 0x11f   :  { %v255_v34 = vpop.f32.mrf.mxu0  ;;  %532 = vmatmul.mubr.bf16.gmra.mxu1 %v342_v29 }
 0x120   :  { %v256_v35 = vadd.f32 %v255_v34, %v919_v63  ;;  %v318_v36 = vmax.f32 %v254_v32, 0.0 }
 0x121   :  { %v259_v37 = vpop.f32.mrf.mxu0 }
 0x122   :  { %v319_v39 = vmax.f32 %v256_v35, 0.0  ;;  %v344_v43 = vpack.c.bf16 %v318_v36, %v316_v40  ;;  %v260_v47 = vadd.f32 %v259_v37, %v921_v0 }
 0x123   :  { %v261_v41 = vpop.f32.mrf.mxu0 }
 0x124   :  { %v345_v42 = vpack.c.bf16 %v319_v39, %v317_v38  ;;  %v262_v45 = vadd.f32 %v261_v41, %v919_v63  ;;  %v320_v54 = vmax.f32 %v260_v47, 0.0 }
 0x125   :  { %v263_v44 = vpop.f32.mrf.mxu0 }
 0x126   :  { %v264_v46 = vadd.f32 %v263_v44, %v921_v0  ;;  %539 = vmatprep.mubr.bf16.mxu1 %v345_v42  ;;  %v321_v52 = vmax.f32 %v262_v45, 0.0 }
 0x127   :  { %v265_v48 = vpop.f32.mrf.mxu0  ;;  %540 = vmatmul.mubr.bf16.gmra.mxu1 %v344_v43 }
 0x128   :  { %v266_v49 = vadd.f32 %v265_v48, %v919_v63  ;;  %v322_v50 = vmax.f32 %v264_v46, 0.0 }
 0x129   :  { %v269_v51 = vpop.f32.mrf.mxu0 }
 0x12a   :  { %v323_v53 = vmax.f32 %v266_v49, 0.0  ;;  %v346_v57 = vpack.c.bf16 %v322_v50, %v320_v54  ;;  %v270_v61 = vadd.f32 %v269_v51, %v921_v0  ;;  %v958_v51 = vld [vmem:[%s986_s4] ss:$0 sm:$0xff] }
 0x12b   :  { %v271_v55 = vpop.f32.mrf.mxu0 }
 0x12c   :  { %v347_v56 = vpack.c.bf16 %v323_v53, %v321_v52  ;;  %v272_v59 = vadd.f32 %v271_v55, %v919_v63  ;;  %v324_v6 = vmax.f32 %v270_v61, 0.0 }
 0x12d   :  { %v273_v58 = vpop.f32.mrf.mxu0 }
 0x12e   :  { %v274_v60 = vadd.f32 %v273_v58, %v921_v0  ;;  %547 = vmatprep.mubr.bf16.mxu1 %v347_v56  ;;  %v325_v4 = vmax.f32 %v272_v59, 0.0 }
 0x12f   :  { %v275_v62 = vpop.f32.mrf.mxu0  ;;  %548 = vmatmul.mubr.bf16.gmra.mxu1 %v346_v57 }
 0x130   :  { %v276_v1 = vadd.f32 %v275_v62, %v919_v63  ;;  %v326_v2 = vmax.f32 %v274_v60, 0.0 }
 0x131   :  { %v279_v3 = vpop.f32.mrf.mxu0 }
 0x132   :  { %v327_v5 = vmax.f32 %v276_v1, 0.0  ;;  %v348_v9 = vpack.c.bf16 %v326_v2, %v324_v6  ;;  %v280_v13 = vadd.f32 %v279_v3, %v921_v0 }
 0x133   :  { %v281_v7 = vpop.f32.mrf.mxu0 }
 0x134   :  { %v349_v8 = vpack.c.bf16 %v327_v5, %v325_v4  ;;  %v282_v11 = vadd.f32 %v281_v7, %v919_v63  ;;  %v328_v20 = vmax.f32 %v280_v13, 0.0 }
 0x135   :  { %v283_v10 = vpop.f32.mrf.mxu0 }
 0x136   :  { %v284_v12 = vadd.f32 %v283_v10, %v921_v0  ;;  %555 = vmatprep.mubr.bf16.mxu1 %v349_v8  ;;  %v329_v18 = vmax.f32 %v282_v11, 0.0 }
 0x137   :  { %v285_v14 = vpop.f32.mrf.mxu0  ;;  %556 = vmatmul.mubr.bf16.gmra.mxu1 %v348_v9 }
 0x138   :  { %v286_v15 = vadd.f32 %v285_v14, %v919_v63  ;;  %v330_v16 = vmax.f32 %v284_v12, 0.0 }
 0x139   :  { %v289_v17 = vpop.f32.mrf.mxu0 }
 0x13a   :  { %v331_v19 = vmax.f32 %v286_v15, 0.0  ;;  %v350_v23 = vpack.c.bf16 %v330_v16, %v328_v20  ;;  %v290_v27 = vadd.f32 %v289_v17, %v921_v0 }
 0x13b   :  { %v291_v21 = vpop.f32.mrf.mxu0 }
 0x13c   :  { %v351_v22 = vpack.c.bf16 %v331_v19, %v329_v18  ;;  %v292_v25 = vadd.f32 %v291_v21, %v919_v63  ;;  %v332_v34 = vmax.f32 %v290_v27, 0.0 }
 0x13d   :  { %v293_v24 = vpop.f32.mrf.mxu0 }
 0x13e   :  { %v294_v26 = vadd.f32 %v293_v24, %v921_v0  ;;  %563 = vmatprep.mubr.bf16.mxu1 %v351_v22  ;;  %v333_v32 = vmax.f32 %v292_v25, 0.0 }
 0x13f   :  { %v295_v28 = vpop.f32.mrf.mxu0  ;;  %564 = vmatmul.mubr.bf16.gmra.mxu1 %v350_v23 }
 0x140   :  { %v296_v29 = vadd.f32 %v295_v28, %v919_v63  ;;  %v334_v30 = vmax.f32 %v294_v26, 0.0 }
 0x141   :  { %v299_v31 = vpop.f32.mrf.mxu0 }
 0x142   :  { %v335_v33 = vmax.f32 %v296_v29, 0.0  ;;  %v352_v37 = vpack.c.bf16 %v334_v30, %v332_v34  ;;  %v300_v41 = vadd.f32 %v299_v31, %v921_v0 }
 0x143   :  { %v301_v35 = vpop.f32.mrf.mxu0 }
 0x144   :  { %v353_v36 = vpack.c.bf16 %v335_v33, %v333_v32  ;;  %v302_v39 = vadd.f32 %v301_v35, %v919_v63  ;;  %v336_v47 = vmax.f32 %v300_v41, 0.0 }
 0x145   :  { %v303_v38 = vpop.f32.mrf.mxu0 }
 0x146   :  { %v304_v40 = vadd.f32 %v303_v38, %v921_v0  ;;  %571 = vmatprep.mubr.bf16.mxu1 %v353_v36  ;;  %v337_v45 = vmax.f32 %v302_v39, 0.0 }
 0x147   :  { %v305_v42 = vpop.f32.mrf.mxu0  ;;  %572 = vmatmul.mubr.bf16.gmra.mxu1 %v352_v37 }
 0x148   :  { %v306_v43 = vadd.f32 %v305_v42, %v919_v63  ;;  %v338_v44 = vmax.f32 %v304_v40, 0.0 }
 0x14a   :  { %v339_v46 = vmax.f32 %v306_v43, 0.0  ;;  %v354_v49 = vpack.c.bf16 %v338_v44, %v336_v47 }
 0x14c   :  { %v355_v48 = vpack.c.bf16 %v339_v46, %v337_v45 }
 0x14e   :  { %579 = vmatprep.mubr.bf16.mxu1 %v355_v48 }
 0x14f   :  { %580 = vmatmul.mubr.bf16.gmra.mxu1 %v354_v49 }
 0x1d7   :  { %v671_v50 = vpop.f32.mrf.mxu1 }
 0x1d9   :  { %v672_v52 = vpop.f32.mrf.mxu1 }
 0x1da   :  { %v673_v0 = vadd.f32 %v672_v52, %v671_v50 }
 0x1db   :  { %v674_v53 = vpop.f32.mrf.mxu1 }
 0x1dc   :  { %v526_v54 = vadd.f32 %v673_v0, %v958_v51 }
 0x1dd   :  { %v675_v63 = vpop.f32.mrf.mxu1 }
 0x1de   :  { %588 = vst [vmem:[#allocation8] sm:$0xff] %v526_v54  ;;  %v676_v55 = vadd.f32 %v675_v63, %v674_v53 }
 0x1df   :  { %v677_v56 = vpop.f32.mrf.mxu1 }
 0x1e0   :  { %v529_v57 = vadd.f32 %v676_v55, %v958_v51 }
 0x1e1   :  { %v678_v58 = vpop.f32.mrf.mxu1 }
 0x1e2   :  { %589 = vst [vmem:[#allocation8 + $0x8] sm:$0xff] %v529_v57  ;;  %v679_v59 = vadd.f32 %v678_v58, %v677_v56 }
 0x1e3   :  { %v680_v60 = vpop.f32.mrf.mxu1 }
 0x1e4   :  { %v534_v61 = vadd.f32 %v679_v59, %v958_v51 }
 0x1e5   :  { %v681_v62 = vpop.f32.mrf.mxu1 }
 0x1e6   :  { %590 = vst [vmem:[#allocation8 + $0x10] sm:$0xff] %v534_v61  ;;  %v682_v1 = vadd.f32 %v681_v62, %v680_v60 }
 0x1e7   :  { %v683_v2 = vpop.f32.mrf.mxu1 }
 0x1e8   :  { %v537_v3 = vadd.f32 %v682_v1, %v958_v51 }
 0x1e9   :  { %v684_v4 = vpop.f32.mrf.mxu1 }
 0x1ea   :  { %591 = vst [vmem:[#allocation8 + $0x18] sm:$0xff] %v537_v3  ;;  %v685_v5 = vadd.f32 %v684_v4, %v683_v2 }
 0x1eb   :  { %v686_v6 = vpop.f32.mrf.mxu1 }
 0x1ec   :  { %v542_v7 = vadd.f32 %v685_v5, %v958_v51 }
 0x1ed   :  { %v687_v8 = vpop.f32.mrf.mxu1 }
 0x1ee   :  { %592 = vst [vmem:[#allocation8 + $0x20] sm:$0xff] %v542_v7  ;;  %v688_v9 = vadd.f32 %v687_v8, %v686_v6 }
 0x1ef   :  { %v689_v10 = vpop.f32.mrf.mxu1 }
 0x1f0   :  { %v545_v11 = vadd.f32 %v688_v9, %v958_v51 }
 0x1f1   :  { %v690_v12 = vpop.f32.mrf.mxu1 }
 0x1f2   :  { %593 = vst [vmem:[#allocation8 + $0x28] sm:$0xff] %v545_v11  ;;  %v691_v13 = vadd.f32 %v690_v12, %v689_v10 }
 0x1f3   :  { %v692_v14 = vpop.f32.mrf.mxu1 }
 0x1f4   :  { %v550_v15 = vadd.f32 %v691_v13, %v958_v51 }
 0x1f5   :  { %v693_v16 = vpop.f32.mrf.mxu1 }
 0x1f6   :  { %594 = vst [vmem:[#allocation8 + $0x30] sm:$0xff] %v550_v15  ;;  %v694_v17 = vadd.f32 %v693_v16, %v692_v14 }
 0x1f7   :  { %v695_v18 = vpop.f32.mrf.mxu1 }
 0x1f8   :  { %v553_v19 = vadd.f32 %v694_v17, %v958_v51 }
 0x1f9   :  { %v696_v20 = vpop.f32.mrf.mxu1 }
 0x1fa   :  { %595 = vst [vmem:[#allocation8 + $0x38] sm:$0xff] %v553_v19  ;;  %v697_v21 = vadd.f32 %v696_v20, %v695_v18 }
 0x1fb   :  { %v698_v22 = vpop.f32.mrf.mxu1 }
 0x1fc   :  { %v558_v23 = vadd.f32 %v697_v21, %v958_v51 }
 0x1fd   :  { %v699_v24 = vpop.f32.mrf.mxu1 }
 0x1fe   :  { %596 = vst [vmem:[#allocation8 + $0x40] sm:$0xff] %v558_v23  ;;  %v700_v25 = vadd.f32 %v699_v24, %v698_v22 }
 0x1ff   :  { %v701_v26 = vpop.f32.mrf.mxu1 }
 0x200   :  { %v561_v27 = vadd.f32 %v700_v25, %v958_v51 }
 0x201   :  { %v702_v28 = vpop.f32.mrf.mxu1 }
 0x202   :  { %597 = vst [vmem:[#allocation8 + $0x48] sm:$0xff] %v561_v27  ;;  %v703_v29 = vadd.f32 %v702_v28, %v701_v26 }
 0x203   :  { %v704_v30 = vpop.f32.mrf.mxu1 }
 0x204   :  { %v566_v31 = vadd.f32 %v703_v29, %v958_v51 }
 0x205   :  { %v705_v32 = vpop.f32.mrf.mxu1 }
 0x206   :  { %598 = vst [vmem:[#allocation8 + $0x50] sm:$0xff] %v566_v31  ;;  %v706_v33 = vadd.f32 %v705_v32, %v704_v30 }
 0x207   :  { %v707_v34 = vpop.f32.mrf.mxu1 }
 0x208   :  { %v569_v35 = vadd.f32 %v706_v33, %v958_v51 }
 0x209   :  { %v708_v36 = vpop.f32.mrf.mxu1 }
 0x20a   :  { %599 = vst [vmem:[#allocation8 + $0x58] sm:$0xff] %v569_v35  ;;  %v709_v37 = vadd.f32 %v708_v36, %v707_v34 }
 0x20b   :  { %v710_v38 = vpop.f32.mrf.mxu1 }
 0x20c   :  { %v574_v39 = vadd.f32 %v709_v37, %v958_v51 }
 0x20d   :  { %v711_v40 = vpop.f32.mrf.mxu1 }
 0x20e   :  { %600 = vst [vmem:[#allocation8 + $0x60] sm:$0xff] %v574_v39  ;;  %v712_v41 = vadd.f32 %v711_v40, %v710_v38 }
 0x20f   :  { %v713_v42 = vpop.f32.mrf.mxu1 }
 0x210   :  { %v577_v43 = vadd.f32 %v712_v41, %v958_v51 }
 0x211   :  { %v714_v44 = vpop.f32.mrf.mxu1 }
 0x212   :  { %601 = vst [vmem:[#allocation8 + $0x68] sm:$0xff] %v577_v43  ;;  %v715_v45 = vadd.f32 %v714_v44, %v713_v42 }
 0x213   :  { %v716_v46 = vpop.f32.mrf.mxu1 }
 0x214   :  { %v582_v47 = vadd.f32 %v715_v45, %v958_v51 }
 0x215   :  { %v717_v48 = vpop.f32.mrf.mxu1 }
 0x216   :  { %602 = vst [vmem:[#allocation8 + $0x70] sm:$0xff] %v582_v47  ;;  %v718_v49 = vadd.f32 %v717_v48, %v716_v46 }
 0x218   :  { %v585_v50 = vadd.f32 %v718_v49, %v958_v51 }
 0x21a   :  { %603 = vst [vmem:[#allocation8 + $0x78] sm:$0xff] %v585_v50 }
 0x21b   :  { %608 = vsyncadd [#allocation4], 1792  ;;  %s862_s4 = smov [#allocation8]  }
 0x21c   :  { %s609_s13 = sshll.u32 %s862_s4, 4  ;;  %s610_s13 = int_to_ptr.vmem [resolvable:$true] %s609_s13 }
 0x21d   :  { %s828_s14 = scalar_lea.vmem %s610_s13, 256  ;;  %s832_s15 = scalar_lea.vmem %s610_s13, 2048 }
 0x21e   :  { %p829_p1 = scmp.ne.s32.totalorder %s610_s13, %s828_s14  ;;  %p833_p2 = scmp.lt.s32.totalorder %s610_s13, %s610_s13 }
 0x21f   :  { %p834_p3 = scmp.lt.s32.totalorder %s832_s15, %s828_s14 }
 0x221   :  { %p835_p4 = por %p834_p3, %p833_p2 }
 0x223   :  { %p836_p5 = pnand %p835_p4, %p829_p1 }
 0x225   :  { %839 = shalt.err (!%p836_p5)
}
 0x226   :  { %615 = dma.vmem_to_hbm [thread:$0]  %s610_s13, 256, %s987_s5, [#allocation4], %s856_s23, %s856_s23, %s857_s24  }
 0x227   :  { %852 = dma.done.wait [#allocation4], 2048  }
 0x228   :  { %853 = vsyncadd [#allocation4], 4294965248 }
 0x229   :  { %619 = vsyncpa [#allocation3], 1 }
 0x22a   :  { %620 = vsyncpa [#allocation6], 1 }
 0x22b   :  { %621 = vsyncpa [#allocation4], 1 }

</bundles_post_ra>
